<compile_context>
chip_gen: v5e
topology: v5e:2x2
jax: 0.10.0
libtpu: 0.0.40
codegen_flags: <defaults>
</compile_context>

<pallas_src>
import functools

import jax
import jax.numpy as jnp
from jax.experimental import pallas as pl
from jax.experimental.pallas import tpu as pltpu

FN_WEIGHT = 2.0  # deterministic "parameters" from __init__ defaults
FP_WEIGHT = 1.0

_LANES = 128
_SUBLANES = 8
_PRED_SENTINEL = -1e4  # bce(-1e4, 0) == 0 exactly in f32; neither asymmetric mask fires.


def _asym_loss_kernel(pred_ref, tgt_ref, out_ref, acc_ref, *,
                      fn_weight, fp_weight, tile_rows, rows, has_oob_rows):
    # pred_ref / tgt_ref: (tile_rows, 128) VMEM tiles.
    # out_ref: (1, 1) per-core partial sum in SMEM (block indexed by the parallel axis).
    # acc_ref: (acc_rows, 128) f32 VMEM accumulator, persists across the sequential axis.
    pid_p = pl.program_id(0)            # core-parallel axis
    pid_t = pl.program_id(1)            # sequential reduction axis
    tiles_per_split = pl.num_programs(1)

    @pl.when(pid_t == 0)
    def _():
        acc_ref[...] = jnp.zeros_like(acc_ref)

    x = pred_ref[...].astype(jnp.float32)
    y = tgt_ref[...].astype(jnp.float32)

    # sigmoid(x) < 0.5 <=> x < 0 (and > on the other side): no sigmoid on the EUP.
    fn_mask = (x < 0.0) & (y > 0.5)     # missed positive -> heavier weight
    # Numerically stable binary_cross_entropy_with_logits (reduction='none'):
    #   max(x, 0) - x*y + log1p(exp(-|x|))
    bce = jnp.maximum(x, 0.0) - x * y + jnp.log1p(jnp.exp(-jnp.abs(x)))

    if fp_weight == 1.0:
        # Default config: the false-positive branch is a no-op weight; skip its work.
        w = jnp.where(fn_mask, jnp.float32(fn_weight), jnp.float32(1.0))
    else:
        fp_mask = (x > 0.0) & (y < 0.5)  # false alarm
        w = jnp.where(fn_mask, jnp.float32(fn_weight),
                      jnp.where(fp_mask, jnp.float32(fp_weight), jnp.float32(1.0)))
    contrib = w * bce

    def _accumulate(c):
        # Fold (tile_rows, 128) -> (8, 128) partial sums on the VPU; the single cross-lane
        # XLU reduction happens once at finalize.
        if tile_rows % _SUBLANES == 0:
            acc_ref[...] += c.reshape(tile_rows // _SUBLANES, _SUBLANES, _LANES).sum(axis=0)
        else:
            acc_ref[...] += c.sum(axis=0, keepdims=True)   # single-tile small-batch path

    if has_oob_rows:
        g = pid_p * tiles_per_split + pid_t                # global tile index
        tile_start = g * tile_rows
        fully_valid = tile_start + tile_rows <= rows       # hot tiles skip the mask entirely

        @pl.when(fully_valid)
        def _():
            _accumulate(contrib)

        @pl.when(jnp.logical_not(fully_valid))
        def _():
            row_ids = jax.lax.broadcasted_iota(jnp.int32, contrib.shape, 0)
            _accumulate(jnp.where(tile_start + row_ids < rows, contrib, jnp.float32(0.0)))
    else:
        _accumulate(contrib)

    @pl.when(pid_t == tiles_per_split - 1)
    def _():
        out_ref[0, 0] = jnp.sum(acc_ref[...])


def _num_core_splits(num_tiles):
    if num_tiles < 2:
        return 1
    if num_tiles % 2 == 0:
        return 2   # even split: zero waste on 1-TC chips, ~2x on multi-TC chips
    kind = ""
    try:
        kind = jax.devices()[0].device_kind.lower()
    except Exception:
        pass
    return 2 if any(t in kind for t in ("v7", "v5p", "v4")) else 1


def asymmetric_loss(predictions, targets, fn_weight=FN_WEIGHT, fp_weight=FP_WEIGHT,
                    max_tile_rows=2048):
    """predictions: [B] logits, targets: [B] labels in {0,1}. Returns scalar f32 loss.

    For peak bandwidth pass targets in a narrow dtype (bf16/int8/bool); they are streamed
    as-is and upcast in-register inside the kernel.
    """
    assert predictions.ndim == 1 and targets.shape == predictions.shape
    assert max_tile_rows % _SUBLANES == 0
    b = predictions.shape[0]

    rows = pl.cdiv(b, _LANES)
    padded = rows * _LANES

    pred, tgt = predictions, targets
    if padded != b:
        # TODO(synk): ragged B costs one extra pad pass over each input; producers that emit
        # 128-multiple batches (or pre-padded 2-D slabs) hit the zero-copy path below.
        # Sentinel values contribute exactly zero loss, so no per-element tail mask is needed.
        pad = padded - b
        pred = jnp.pad(pred, (0, pad), constant_values=_PRED_SENTINEL)
        if tgt.dtype.itemsize > 2:
            # Fold the label downcast into the same pad pass (labels in {0,1} exact in bf16).
            tgt = tgt.astype(jnp.bfloat16)
        tgt = jnp.pad(tgt, (0, pad), constant_values=0)
    pred2d = pred.reshape(rows, _LANES)    # free (no copy) when padded == b
    tgt2d = tgt.reshape(rows, _LANES)

    tile_rows = rows if rows <= max_tile_rows else max_tile_rows
    num_tiles = pl.cdiv(rows, tile_rows)
    num_parallel = _num_core_splits(num_tiles)
    tiles_per_split = pl.cdiv(num_tiles, num_parallel)
    grid_tiles = num_parallel * tiles_per_split
    has_oob_rows = grid_tiles * tile_rows != rows
    acc_rows = _SUBLANES if tile_rows % _SUBLANES == 0 else 1

    if grid_tiles == num_tiles:
        in_idx = lambda p, t: (p * tiles_per_split + t, 0)
    else:
        # Odd tile count split across 2 cores: clamp the trailing dummy block in-bounds;
        # its contribution is zeroed by the in-kernel row mask.
        in_idx = lambda p, t: (jnp.minimum(p * tiles_per_split + t, num_tiles - 1), 0)

    kernel = functools.partial(
        _asym_loss_kernel,
        fn_weight=float(fn_weight), fp_weight=float(fp_weight),
        tile_rows=tile_rows, rows=rows, has_oob_rows=has_oob_rows,
    )

    bytes_accessed = (pred2d.size * pred2d.dtype.itemsize
                      + tgt2d.size * tgt2d.dtype.itemsize + 4 * num_parallel)
    cost = pl.CostEstimate(flops=10 * b, transcendentals=2 * b,
                           bytes_accessed=bytes_accessed)

    partials = pl.pallas_call(
        kernel,
        out_shape=jax.ShapeDtypeStruct((num_parallel, 1), jnp.float32),
        grid_spec=pltpu.PrefetchScalarGridSpec(
            num_scalar_prefetch=0,
            grid=(num_parallel, tiles_per_split),
            in_specs=[
                pl.BlockSpec((tile_rows, _LANES), in_idx),
                pl.BlockSpec((tile_rows, _LANES), in_idx),
            ],
            out_specs=pl.BlockSpec((1, 1), lambda p, t: (p, 0),
                                   memory_space=pltpu.MemorySpace.SMEM),
            scratch_shapes=[pltpu.VMEM((acc_rows, _LANES), jnp.float32)],
        ),
        compiler_params=pltpu.CompilerParams(
            dimension_semantics=("parallel", "arbitrary"),
            vmem_limit_bytes=32 * 1024 * 1024,
        ),
        cost_estimate=cost,
    )(pred2d, tgt2d)

    return jnp.sum(partials) / jnp.float32(b)


def _reference_loss(predictions, targets, fn_weight=FN_WEIGHT, fp_weight=FP_WEIGHT):
    x = predictions.astype(jnp.float32)
    y = targets.astype(jnp.float32)
    probs = jax.nn.sigmoid(x)
    fn_mask = (probs < 0.5) & (y > 0.5)
    fp_mask = (probs > 0.5) & (y < 0.5)
    bce = jnp.maximum(x, 0.0) - x * y + jnp.log1p(jnp.exp(-jnp.abs(x)))
    w = jnp.where(fn_mask, fn_weight, jnp.where(fp_mask, fp_weight, 1.0))
    return jnp.sum(w * bce) / x.shape[0]


if __name__ == "__main__":
    key = jax.random.PRNGKey(0)

    def make(batch, k, tgt_dtype=jnp.float32):
        k1, k2 = jax.random.split(k)
        preds = jax.random.normal(k1, (batch,), dtype=jnp.float32) * 2.0
        tgts = jax.random.bernoulli(k2, 0.5, (batch,)).astype(tgt_dtype)
        return preds, tgts

    # Test 1: module-scale batch (8): single tile, ragged sentinel-pad path, (1,128) acc.
    k1, key = jax.random.split(key)
    p1, t1 = make(8, k1)
    loss1 = jax.block_until_ready(asymmetric_loss(p1, t1))
    ref1 = _reference_loss(p1, t1)
    assert jnp.allclose(loss1, ref1, rtol=1e-5, atol=1e-5), (loss1, ref1)

    # Test 2: ragged B, multi-tile, even tile count -> 2-way parallel split, partial last tile.
    k2, key = jax.random.split(key)
    p2, t2 = make(3300, k2)
    loss2 = jax.block_until_ready(asymmetric_loss(p2, t2, max_tile_rows=8))
    ref2 = _reference_loss(p2, t2)
    assert jnp.allclose(loss2, ref2, rtol=1e-5, atol=1e-5), (loss2, ref2)

    # Test 3: B % 128 == 0 zero-copy path with bf16 labels, odd tile count (no split on
    # single-TC chips; clamped dummy block on multi-TC chips), partial last tile.
    k3, key = jax.random.split(key)
    p3, t3 = make(2176, k3, tgt_dtype=jnp.bfloat16)
    loss3 = jax.block_until_ready(asymmetric_loss(p3, t3, max_tile_rows=8))
    ref3 = _reference_loss(p3, t3)
    assert jnp.allclose(loss3, ref3, rtol=1e-5, atol=1e-5), (loss3, ref3)

    print("KERNEL_OK")
</pallas_src>

<mosaic_0001>
module attributes {stable_mosaic.version = 11 : i64} {
  func.func @_asym_loss_kernel(%arg0: i32, %arg1: i32, %arg2: memref<1x128xf32, #tpu.memory_space<vmem>>, %arg3: memref<1x128xbf16, #tpu.memory_space<vmem>>, %arg4: memref<1x1xf32, #tpu.memory_space<smem>>, %arg5: memref<1x128xf32, #tpu.memory_space<vmem>>) attributes {dimension_semantics = [#tpu.dimension_semantics<parallel>, #tpu.dimension_semantics<arbitrary>], iteration_bounds = array<i64: 1, 1>, scalar_prefetch = 0 : i64, scratch_operands = 1 : i64, tpu.core_type = #tpu.core_type<tc>, window_params = [{transform_indices = @transform_0, window_bounds = array<i64: 1, 128>}, {transform_indices = @transform_1, window_bounds = array<i64: 1, 128>}, {transform_indices = @transform_2, window_bounds = array<i64: 1, 1>}]} {
    %c0_i32 = arith.constant 0 : i32
    %0 = arith.cmpi eq, %arg1, %c0_i32 : i32
    %1 = arith.extui %0 : i1 to i32
    %c0_i32_0 = arith.constant 0 : i32
    %2 = arith.cmpi ne, %1, %c0_i32_0 : i32
    scf.if %2 {
      %cst_16 = arith.constant 0.000000e+00 : f32
      %33 = vector.broadcast %cst_16 : f32 to vector<1x128xf32>
      %c0_17 = arith.constant 0 : index
      %c0_18 = arith.constant 0 : index
      %34 = vector.load %arg5[%c0_17, %c0_18] : memref<1x128xf32, #tpu.memory_space<vmem>>, vector<1x128xf32>
      tpu.vector_store %arg5[%c0_17, %c0_18], %33 {strides = array<i32>} : memref<1x128xf32, #tpu.memory_space<vmem>>, vector<1x128xf32>,
    } else {
    }
    %c0 = arith.constant 0 : index
    %c0_1 = arith.constant 0 : index
    %3 = vector.load %arg2[%c0, %c0_1] : memref<1x128xf32, #tpu.memory_space<vmem>>, vector<1x128xf32>
    %c0_2 = arith.constant 0 : index
    %c0_3 = arith.constant 0 : index
    %4 = vector.load %arg3[%c0_2, %c0_3] : memref<1x128xbf16, #tpu.memory_space<vmem>>, vector<1x128xbf16>
    %5 = arith.extf %4 : vector<1x128xbf16> to vector<1x128xf32>
    %cst = arith.constant 0.000000e+00 : f32
    %6 = vector.broadcast %cst : f32 to vector<1x128xf32>
    %7 = arith.cmpf olt, %3, %6 : vector<1x128xf32>
    %cst_4 = arith.constant 5.000000e-01 : f32
    %8 = vector.broadcast %cst_4 : f32 to vector<1x128xf32>
    %9 = arith.cmpf ogt, %5, %8 : vector<1x128xf32>
    %10 = arith.andi %7, %9 : vector<1x128xi1>
    %cst_5 = arith.constant 0.000000e+00 : f32
    %11 = vector.broadcast %cst_5 : f32 to vector<1x128xf32>
    %12 = arith.maximumf %3, %11 : vector<1x128xf32>
    %13 = arith.mulf %3, %5 : vector<1x128xf32>
    %14 = arith.subf %12, %13 : vector<1x128xf32>
    %15 = math.absf %3 : vector<1x128xf32>
    %cst_6 = arith.constant 0.000000e+00 : f32
    %16 = vector.broadcast %cst_6 : f32 to vector<1x128xf32>
    %17 = arith.subf %16, %15 : vector<1x128xf32>
    %18 = math.exp %17 : vector<1x128xf32>
    %19 = math.log1p %18 : vector<1x128xf32>
    %20 = arith.addf %14, %19 : vector<1x128xf32>
    %cst_7 = arith.constant 2.000000e+00 : f32
    %cst_8 = arith.constant 1.000000e+00 : f32
    %21 = vector.broadcast %cst_7 : f32 to vector<1x128xf32>
    %22 = vector.broadcast %cst_8 : f32 to vector<1x128xf32>
    %23 = arith.select %10, %21, %22 : vector<1x128xi1>, vector<1x128xf32>
    %24 = arith.mulf %23, %20 : vector<1x128xf32>
    %c0_9 = arith.constant 0 : index
    %c0_10 = arith.constant 0 : index
    %25 = vector.load %arg5[%c0_9, %c0_10] : memref<1x128xf32, #tpu.memory_space<vmem>>, vector<1x128xf32>
    %cst_11 = arith.constant dense<0.000000e+00> : vector<128xf32>
    %26 = vector.multi_reduction <add>, %24, %cst_11 [0] : vector<1x128xf32> to vector<128xf32>
    %27 = vector.shape_cast %26 : vector<128xf32> to vector<1x128xf32>
    %28 = arith.addf %25, %27 : vector<1x128xf32>
    %c0_12 = arith.constant 0 : index
    %c0_13 = arith.constant 0 : index
    %29 = vector.load %arg5[%c0_12, %c0_13] : memref<1x128xf32, #tpu.memory_space<vmem>>, vector<1x128xf32>
    tpu.vector_store %arg5[%c0_12, %c0_13], %28 {strides = array<i32>} : memref<1x128xf32, #tpu.memory_space<vmem>>, vector<1x128xf32>,
    %c0_i32_14 = arith.constant 0 : i32
    %30 = arith.cmpi eq, %arg1, %c0_i32_14 : i32
    %31 = arith.extui %30 : i1 to i32
    %c0_i32_15 = arith.constant 0 : i32
    %32 = arith.cmpi ne, %31, %c0_i32_15 : i32
    scf.if %32 {
      %c0_16 = arith.constant 0 : index
      %c0_17 = arith.constant 0 : index
      %33 = vector.load %arg5[%c0_16, %c0_17] : memref<1x128xf32, #tpu.memory_space<vmem>>, vector<1x128xf32>
      %34 = vector.shape_cast %33 : vector<1x128xf32> to vector<1x1x128xf32>
      %cst_18 = arith.constant dense<0.000000e+00> : vector<1xf32>
      %35 = vector.multi_reduction <add>, %34, %cst_18 [1, 2] : vector<1x1x128xf32> to vector<1xf32>
      %36 = vector.shape_cast %35 : vector<1xf32> to vector<1x1x1xf32>
      %37 = vector.extract %36[0, 0, 0] : f32 from vector<1x1x1xf32>
      %c0_19 = arith.constant 0 : index
      %c0_20 = arith.constant 0 : index
      %38 = memref.load %arg4[%c0_19, %c0_20] : memref<1x1xf32, #tpu.memory_space<smem>>
      memref.store %37, %arg4[%c0_19, %c0_20] : memref<1x1xf32, #tpu.memory_space<smem>>
    } else {
    }
    return
  }
  func.func @transform_0(%arg0: i32, %arg1: i32) -> (i32, i32) {
    %c1_i32 = arith.constant 1 : i32
    %0 = arith.muli %arg0, %c1_i32 : i32
    %1 = arith.addi %0, %arg1 : i32
    %c0_i32 = arith.constant 0 : i32
    %c0_i32_0 = arith.constant 0 : i32
    return %1, %c0_i32 : i32, i32
  }
  func.func @transform_1(%arg0: i32, %arg1: i32) -> (i32, i32) {
    %c1_i32 = arith.constant 1 : i32
    %0 = arith.muli %arg0, %c1_i32 : i32
    %1 = arith.addi %0, %arg1 : i32
    %c0_i32 = arith.constant 0 : i32
    %c0_i32_0 = arith.constant 0 : i32
    return %1, %c0_i32 : i32, i32
  }
  func.func @transform_2(%arg0: i32, %arg1: i32) -> (i32, i32) {
    %c0_i32 = arith.constant 0 : i32
    %c0_i32_0 = arith.constant 0 : i32
    return %arg0, %c0_i32 : i32, i32
  }
}

</mosaic_0001>

<bundles_post_ra>
// kernel: tpu_custom_call.1
= control target key start
LH: loop header
LB: loop body
LE: loop exit
PB: predicated region body
PF: predicated region fallthrough
CT: control target
= control target key end

     0   :  { %7 = vsyncpa [#allocation4], 0  ;;  %s220_s0 = inlined_call_operand.hbm [shape: f32[1,128], index: 0, kind: input, shape index: {}]   ;;  %s221_s1 = inlined_call_operand.hbm [shape: bf16[1,128], index: 1, kind: input, shape index: {}]   ;;  %s222_s2 = inlined_call_operand.hbm [shape: f32[1,1], index: 2, kind: output, shape index: {}]  }
   0x1   :  { %8 = vsyncpa [#allocation7], 0 }
   0x2   :  { %9 = vsyncpa [#allocation5], 0  ;;  %s17_s11 = sshll.u32 %s220_s0, 4  ;;  %s191_s12 = smov [#allocation3]   ;;  %s18_s11 = int_to_ptr.hbm [resolvable:$true] %s17_s11 }
   0x3   :  { %s19_s13 = sshll.u32 %s191_s12, 4  ;;  %s30_s16 = sshll.u32 %s221_s1, 4  ;;  %s20_s13 = int_to_ptr.vmem [resolvable:$true] %s19_s13  ;;  %s31_s16 = int_to_ptr.hbm [resolvable:$true] %s30_s16 }
   0x4   :  { %22 = dma.hbm_to_vmem [thread:$0]  %s18_s11, 16, %s20_s13, [#allocation4]  }
   0x5   :  { %s192_s17 = smov [#allocation6]  }
   0x6   :  { %s32_s18 = sshll.u32 %s192_s17, 4  ;;  %s33_s18 = int_to_ptr.vmem [resolvable:$true] %s32_s18 }
   0x7   :  { %35 = dma.hbm_to_vmem [thread:$0]  %s31_s16, 16, %s33_s18, [#allocation7]  }
   0x8   :  { %185 = dma.done.wait [#allocation4], 16  }
   0x9   :  { %186 = vsyncadd [#allocation4], 4294967280 }
   0xa   :  { %187 = dma.done.wait [#allocation7], 16  }
   0xb   :  { %188 = vsyncadd [#allocation7], 4294967280  ;;  %v193_v0 = vmov 0.0   ;;  %v51_v1 = vld [vmem:[#allocation3] sm:$0x1]  ;;  %v194_v19 = vmov 1.0  }
   0xc   :  { %50 = vst [vmem:[#allocation2] sm:$0x1] %v193_v0  ;;  %v60_v2 = vand.u32 2147483647, %v51_v1  ;;  %v52_v5 = vld [vmem:[#allocation6] sm:$0x1] }
   0xd   :  { %v53_v7 = vunpack.c.l.bf16 %v52_v5  ;;  %v57_v11 = vmax.f32 %v51_v1, 0.0  ;;  %vm54_vm0 = vcmp.lt.f32.partialorder %v51_v1, 0.0  ;;  %vm84_vm4 = vcmask 1040384   ;;  %s102_s19 = sshll.u32 %s222_s2, 4  ;;  %s195_s21 = smov [#allocation8]   ;;  %s103_s19 = int_to_ptr.hbm [resolvable:$true] %s102_s19 }
   0xe   :  { %v61_v3 = vsub.f32 0.0, %v60_v2 }
   0xf   :  { %v58_v12 = vmul.f32 %v53_v7, %v51_v1  ;;  %vm55_vm1 = vcmp.gt.f32.partialorder %v53_v7, 0.5 }
  0x10   :  { %v62_v4 = vmul.f32 1.442695, %v61_v3  ;;  %vm56_vm2 = vmand %vm54_vm0, %vm55_vm1 }
  0x11   :  { %v59_v16 = vsub.f32 %v57_v11, %v58_v12  ;;  %v74_v20 = vsel %vm56_vm2, 2.0, %v194_v19 }
  0x12   :  { %121 = vpow2.f32 %v62_v4 }
  0x13   :  { %v76_v22 = vld [vmem:[#allocation2] sm:$0x1] }
  0x18   :  { %v122_v6 = vpop.eup %121 }
  0x19   :  { %v64_v8 = vadd.f32 1.0, %v122_v6  ;;  %v67_v9 = vmul.f32 -0.5, %v122_v6  ;;  %v70_v13 = vand.u32 2147483647, %v122_v6 }
  0x1b   :  { %123 = vlog2.f32 %v64_v8  ;;  %v68_v10 = vadd.f32 1.0, %v67_v9  ;;  %vm71_vm3 = vcmp.lt.f32.partialorder %v70_v13, 0.0004427343 }
  0x1d   :  { %v69_v14 = vmul.f32 %v122_v6, %v68_v10 }
  0x21   :  { %v124_v15 = vpop.eup %123 }
  0x22   :  { %v66_v17 = vmul.f32 0.6931472, %v124_v15 }
  0x24   :  { %v72_v18 = vsel %vm71_vm3, %v69_v14, %v66_v17 }
  0x25   :  { %v73_v21 = vadd.f32 %v72_v18, %v59_v16 }
  0x27   :  { %v75_v23 = vmul.f32 %v74_v20, %v73_v21 }
  0x29   :  { %v78_v24 = vadd.f32 %v76_v22, %v75_v23 }
  0x2b   :  { %79 = vst [vmem:[#allocation2] sm:$0x1] %v78_v24 }
  0x32   :  { %v83_v25 = vld [vmem:[#allocation2] sm:$0x1] }
  0x33   :  { %v85_v26 = vsel %vm84_vm4, %v83_v25, 0.0 }
  0x34   :  { %86 = vadd.xlane.f32.xlu0 %v85_v26 }
  0xa7   :  { %v87_v27 = vpop.xlane.xlu0 %86 }
  0xa8   :  { %v88_v28 = vrot.slane %v87_v27, 4 }
  0xaa   :  { %v89_v29 = vadd.f32 %v88_v28, %v87_v27 }
  0xac   :  { %v90_v30 = vrot.slane %v89_v29, 2 }
  0xae   :  { %v91_v31 = vadd.f32 %v90_v30, %v89_v29 }
  0xb0   :  { %v92_v32 = vrot.slane %v91_v31, 1 }
  0xb2   :  { %v93_v33 = vadd.f32 %v92_v32, %v91_v31 }
  0xb4   :  { %114 = vpush %v93_v33 }
  0xe5   :  { %s115_s20 = spop %114 }
  0xe6   :  { %96 = sst [smem:[#allocation8]] %s115_s20 }
  0xe7   :  { %105 = dma.smem_to_hbm %s195_s21, 16, %s103_s19, [#allocation5]  }
  0xe8   :  { %189 = dma.done.wait [#allocation5], 16  }
  0xe9   :  { %190 = vsyncadd [#allocation5], 4294967280 }
  0xea   :  { %110 = sfence }
  0xeb   :  { %111 = vsyncpa [#allocation4], 1 }
  0xec   :  { %112 = vsyncpa [#allocation7], 1 }
  0xed   :  { %113 = vsyncpa [#allocation5], 1 }

</bundles_post_ra>
